<compile_context>
chip_gen: v5e
topology: v5e:2x2
jax: 0.10.0
libtpu: 0.0.40
codegen_flags: <defaults>
</compile_context>

<pallas_src>
import math

import jax
import jax.numpy as jnp
from jax.experimental import pallas as pl
from jax.experimental.pallas import tpu as pltpu


def _pick_row_tile(h, w, target_rows=4096):
    """Image rows per grid step: ~target_rows output rows, balanced so tail
    padding is minimal (avoids the old M=576 -> 1024 pathology)."""
    cap = max(1, target_rows // max(w, 1))
    if cap >= h:
        return h
    n_tiles = -(-h // cap)          # cdiv
    return -(-h // n_tiles)         # balanced tile height


def overlap_patch_embed(x_nchw, weight_oihw, *,
                        out_dtype=jnp.bfloat16,
                        compute_dtype=jnp.bfloat16):
    """x_nchw: (B, Cin, H, W); weight_oihw: (Cout, Cin, 3, 3).
    Returns (B, H*W, Cout) in `out_dtype` (bf16 model compute dtype)."""
    B, Cin, H, W = x_nchw.shape
    Cout = weight_oihw.shape[0]

    TH = _pick_row_tile(H, W)
    n_t = -(-H // TH)
    H_pad = n_t * TH
    TM = TH * W
    K = 9 * Cin

    # ---- glue (tiny traffic): NCHW -> padded NHWC -> halo'd row-tiles ------
    x_nhwc = jnp.transpose(x_nchw, (0, 2, 3, 1)).astype(compute_dtype)
    # 1-px conv padding + extra zero rows so H divides evenly into tiles.
    xp = jnp.pad(x_nhwc, ((0, 0), (1, 1 + (H_pad - H)), (1, 1), (0, 0)))
    if n_t == 1:
        chunks = xp[:, None]
    else:
        chunks = jnp.stack(
            [xp[:, t * TH:t * TH + TH + 2] for t in range(n_t)], axis=1)
    chunks = chunks.reshape(B * n_t, TH + 2, W + 2, Cin)

    # Folded conv weights: (Cout, Cin, 3, 3) -> (kh, kw, Cin, Cout) -> (K, Cout)
    # (row order matches the in-kernel tap concat order: kh major, kw, cin).
    w_mat = jnp.transpose(weight_oihw, (2, 3, 1, 0)).reshape(K, Cout)
    w_mat = w_mat.astype(compute_dtype)

    def kernel(x_ref, w_ref, o_ref):
        # x_ref: (1, TH+2, W+2, Cin) halo'd tile; w_ref: (K, Cout) resident.
        x = x_ref[0]
        # In-VMEM im2col: 9 shifted taps -> (TH, W, 9*Cin) -> (TM, 9*Cin).
        cols = [x[kh:kh + TH, kw:kw + W, :]
                for kh in range(3) for kw in range(3)]
        slab = jnp.concatenate(cols, axis=-1).reshape(TM, K)
        acc = jnp.dot(slab, w_ref[...], preferred_element_type=jnp.float32)
        o_ref[0] = acc.astype(o_ref.dtype)

    out = pl.pallas_call(
        kernel,
        out_shape=jax.ShapeDtypeStruct((B * n_t, TM, Cout), out_dtype),
        grid_spec=pltpu.PrefetchScalarGridSpec(
            num_scalar_prefetch=0,
            grid=(B * n_t,),
            in_specs=[
                pl.BlockSpec((1, TH + 2, W + 2, Cin),
                             lambda g: (g, 0, 0, 0)),
                pl.BlockSpec((K, Cout), lambda g: (0, 0)),
            ],
            out_specs=pl.BlockSpec((1, TM, Cout), lambda g: (g, 0, 0)),
        ),
        compiler_params=pltpu.CompilerParams(
            dimension_semantics=("parallel",),
        ),
    )(chunks, w_mat)

    out = out.reshape(B, H_pad * W, Cout)
    if H_pad != H:
        out = out[:, :H * W, :]
    return out


if __name__ == "__main__":
    B, Cin, H, W = 2, 4, 16, 16
    Cout = 48  # embed_dim

    key = jax.random.PRNGKey(0)
    kx, kw = jax.random.split(key)
    x = jax.random.normal(kx, (B, Cin, H, W), dtype=jnp.float32)
    # Deterministic Conv2d-like weight init, bias=False.
    bound = 1.0 / math.sqrt(Cin * 3 * 3)
    weight = jax.random.uniform(kw, (Cout, Cin, 3, 3),
                                minval=-bound, maxval=bound,
                                dtype=jnp.float32)

    out = overlap_patch_embed(x, weight)
    out = jax.block_until_ready(out)
    assert out.shape == (B, H * W, Cout)
    assert out.dtype == jnp.bfloat16
    out_f32 = out.astype(jnp.float32)

    # Reference 1: bf16 operands, f32 accumulation (matches kernel numerics
    # up to the final bf16 output rounding).
    ref_bf16 = jax.lax.conv_general_dilated(
        x.astype(jnp.bfloat16), weight.astype(jnp.bfloat16),
        window_strides=(1, 1), padding=((1, 1), (1, 1)),
        dimension_numbers=("NCHW", "OIHW", "NCHW"),
        preferred_element_type=jnp.float32)
    ref_bf16 = jnp.transpose(ref_bf16.reshape(B, Cout, H * W), (0, 2, 1))
    assert jnp.allclose(out_f32, ref_bf16, atol=3e-2, rtol=3e-2), \
        "mismatch vs bf16-matched reference"

    # Reference 2: full-f32 conv (loose: bf16 operand + bf16 output rounding).
    ref_f32 = jax.lax.conv_general_dilated(
        x, weight, window_strides=(1, 1), padding=((1, 1), (1, 1)),
        dimension_numbers=("NCHW", "OIHW", "NCHW"))
    ref_f32 = jnp.transpose(ref_f32.reshape(B, Cout, H * W), (0, 2, 1))
    assert jnp.allclose(out_f32, ref_f32, atol=8e-2, rtol=8e-2), \
        "mismatch vs f32 reference"

    print("KERNEL_OK")
</pallas_src>

<mosaic_0001>
module attributes {stable_mosaic.version = 11 : i64} {
  func.func @kernel(%arg0: i32, %arg1: memref<1x18x18x4xbf16, #tpu.memory_space<vmem>>, %arg2: memref<36x48xbf16, #tpu.memory_space<vmem>>, %arg3: memref<1x256x48xbf16, #tpu.memory_space<vmem>>) attributes {dimension_semantics = [#tpu.dimension_semantics<parallel>], iteration_bounds = array<i64: 2>, scalar_prefetch = 0 : i64, scratch_operands = 0 : i64, tpu.core_type = #tpu.core_type<tc>, window_params = [{transform_indices = @transform_0, window_bounds = array<i64: 1, 18, 18, 4>}, {pipeline_mode = #tpu.pipeline_mode<synchronous>, transform_indices = @transform_1, window_bounds = array<i64: 36, 48>}, {transform_indices = @transform_2, window_bounds = array<i64: 1, 256, 48>}]} {
    %c0 = arith.constant 0 : index
    %c0_0 = arith.constant 0 : index
    %c0_1 = arith.constant 0 : index
    %c0_2 = arith.constant 0 : index
    %0 = vector.load %arg1[%c0, %c0_0, %c0_1, %c0_2] : memref<1x18x18x4xbf16, #tpu.memory_space<vmem>>, vector<1x18x18x4xbf16>
    %1 = vector.shape_cast %0 : vector<1x18x18x4xbf16> to vector<18x18x4xbf16>
    %2 = vector.extract_strided_slice %1 {offsets = [0, 0, 0], sizes = [16, 16, 4], strides = [1, 1, 1]} : vector<18x18x4xbf16> to vector<16x16x4xbf16>
    %3 = vector.extract_strided_slice %1 {offsets = [0, 1, 0], sizes = [16, 16, 4], strides = [1, 1, 1]} : vector<18x18x4xbf16> to vector<16x16x4xbf16>
    %4 = vector.extract_strided_slice %1 {offsets = [0, 2, 0], sizes = [16, 16, 4], strides = [1, 1, 1]} : vector<18x18x4xbf16> to vector<16x16x4xbf16>
    %5 = vector.extract_strided_slice %1 {offsets = [1, 0, 0], sizes = [16, 16, 4], strides = [1, 1, 1]} : vector<18x18x4xbf16> to vector<16x16x4xbf16>
    %6 = vector.extract_strided_slice %1 {offsets = [1, 1, 0], sizes = [16, 16, 4], strides = [1, 1, 1]} : vector<18x18x4xbf16> to vector<16x16x4xbf16>
    %7 = vector.extract_strided_slice %1 {offsets = [1, 2, 0], sizes = [16, 16, 4], strides = [1, 1, 1]} : vector<18x18x4xbf16> to vector<16x16x4xbf16>
    %8 = vector.extract_strided_slice %1 {offsets = [2, 0, 0], sizes = [16, 16, 4], strides = [1, 1, 1]} : vector<18x18x4xbf16> to vector<16x16x4xbf16>
    %9 = vector.extract_strided_slice %1 {offsets = [2, 1, 0], sizes = [16, 16, 4], strides = [1, 1, 1]} : vector<18x18x4xbf16> to vector<16x16x4xbf16>
    %10 = vector.extract_strided_slice %1 {offsets = [2, 2, 0], sizes = [16, 16, 4], strides = [1, 1, 1]} : vector<18x18x4xbf16> to vector<16x16x4xbf16>
    %11 = tpu.concatenate %2, %3, %4, %5, %6, %7, %8, %9, %10 in 2 : vector<16x16x4xbf16>, vector<16x16x4xbf16>, vector<16x16x4xbf16>, vector<16x16x4xbf16>, vector<16x16x4xbf16>, vector<16x16x4xbf16>, vector<16x16x4xbf16>, vector<16x16x4xbf16>, vector<16x16x4xbf16> -> vector<16x16x36xbf16>
    %12 = vector.shape_cast %11 : vector<16x16x36xbf16> to vector<256x36xbf16>
    %c0_3 = arith.constant 0 : index
    %c0_4 = arith.constant 0 : index
    %13 = vector.load %arg2[%c0_3, %c0_4] : memref<36x48xbf16, #tpu.memory_space<vmem>>, vector<36x48xbf16>
    %cst = arith.constant dense<0.000000e+00> : vector<256x48xf32>
    %14 = tpu.matmul %12, %13, %cst {dimension_numbers = #tpu.dot_dimension_numbers<[1], [0], [0], [1], [0, 0, 1, 1], [], []>} : vector<256x36xbf16>, vector<36x48xbf16>, vector<256x48xf32> -> vector<256x48xf32>
    %15 = arith.truncf %14 : vector<256x48xf32> to vector<256x48xbf16>
    %c0_5 = arith.constant 0 : index
    %c0_6 = arith.constant 0 : index
    %c0_7 = arith.constant 0 : index
    %16 = vector.load %arg3[%c0_5, %c0_6, %c0_7] : memref<1x256x48xbf16, #tpu.memory_space<vmem>>, vector<1x256x48xbf16>
    %17 = vector.shape_cast %16 : vector<1x256x48xbf16> to vector<256x48xbf16>
    %18 = vector.shape_cast %15 : vector<256x48xbf16> to vector<1x256x48xbf16>
    tpu.vector_store %arg3[%c0_5, %c0_6, %c0_7], %18 {strides = array<i32>} : memref<1x256x48xbf16, #tpu.memory_space<vmem>>, vector<1x256x48xbf16>,
    return
  }
  func.func @transform_0(%arg0: i32) -> (i32, i32, i32, i32) {
    %c0_i32 = arith.constant 0 : i32
    %c0_i32_0 = arith.constant 0 : i32
    %c0_i32_1 = arith.constant 0 : i32
    %c0_i32_2 = arith.constant 0 : i32
    return %arg0, %c0_i32, %c0_i32_0, %c0_i32_1 : i32, i32, i32, i32
  }
  func.func @transform_1(%arg0: i32) -> (i32, i32) {
    %c0_i32 = arith.constant 0 : i32
    %c0_i32_0 = arith.constant 0 : i32
    %c0_i32_1 = arith.constant 0 : i32
    return %c0_i32, %c0_i32_0 : i32, i32
  }
  func.func @transform_2(%arg0: i32) -> (i32, i32, i32) {
    %c0_i32 = arith.constant 0 : i32
    %c0_i32_0 = arith.constant 0 : i32
    %c0_i32_1 = arith.constant 0 : i32
    return %arg0, %c0_i32, %c0_i32_0 : i32, i32, i32
  }
}

</mosaic_0001>

<bundles_post_ra>
// kernel: tpu_custom_call.1
= control target key start
LH: loop header
LB: loop body
LE: loop exit
PB: predicated region body
PF: predicated region fallthrough
CT: control target
= control target key end

     0   :  { %s1586_s9 = smov 0   ;;  %s2456_s0 = inlined_call_operand.vmem [shape: bf16[2,18,18,4], index: 0, kind: input, shape index: {}]   ;;  %s2457_s1 = inlined_call_operand.vmem [shape: bf16[36,48], index: 1, kind: input, shape index: {}]   ;;  %s2458_s2 = inlined_call_operand.vmem [shape: bf16[2,256,48], index: 2, kind: output, shape index: {}]  }
   0x1 LB: > { %s1401_s10 = sadd.s32 4294967295, %s1561_s9   ;;  %p1405_p0 = scmp.ge.s32.totalorder %s1561_s9, 1  ;;  %s1561_s9 = sphi %s1586_s9, %s12_s9  }
   0x2   : > { %p112_p1 = scmp.lt.s32.totalorder %s1561_s9, 3 }
   0x4   : > { %p113_p2 = pnand %p1405_p0, %p112_p1 }
   0x6   : > { %116 = sbr.rel (%p113_p2) target bundleno = 617 (0x269), region = 28 }
   0xb   : > { %p134_p3 = scmp.lt.s32.totalorder %s1401_s10, 1  ;;  %vm327_vm0 = vsmask.f32 7424  ;;  %s1563_s15 = smov 4   ;;  %vm552_vm1 = vcmask 1046528   ;;  %vm904_vm2 = vcmask 64512  }
   0xc   : > { %s1564_s16 = smov 8   ;;  %s1565_s17 = smov 12   ;;  %vm871_vm3 = vcmask 31744   ;;  %vm937_vm4 = vcmask 97280   ;;  %vm1188_vm5 = vcmask 1041408   ;;  %vm970_vm6 = vcmask 130048  }
   0xd   : > { %s2469_s10 = smov (!%p134_p3, %s1401_s10), 1  ;;  %s1566_s18 = smov 16   ;;  %vm1003_vm7 = vcmask 162816   ;;  %vm1036_vm8 = vcmask 195584   ;;  %vm1069_vm9 = vcmask 228352   ;;  %vm1102_vm10 = vcmask 261120  }
   0xe   : > { %s1537_s11 = smul.u32 216, %s2469_s10  ;;  %s1567_s19 = smov 20   ;;  %vm1155_vm11 = vcmask 293888   ;;  %vm1313_vm12 = vcmask 388096  }
   0xf   : > { %s1568_s20 = smov 28   ;;  %s1569_s21 = smov 24  }
  0x10   : > { %s1600_s14 = scalar_lea.vmem %s2456_s0, %s1537_s11  ;;  %s1570_s22 = smov 32  }
  0x11   : > { %v1603_v0 = vld [vmem:[%s1600_s14 + $0x30] sm:$0xff]  ;;  %v159_v1 = vld [vmem:[%s1600_s14 + $0x38] sm:$0x1]  ;;  %v153_v4 = vld [vmem:[%s1600_s14 + $0x20] sm:$0x1]  ;;  %s1507_s29 = sshll.u32 %s2469_s10, 7 }
  0x12   : > { %v1607_v2 = vld [vmem:[%s1600_s14 + $0x18] sm:$0xff]  ;;  %v299_v3 = vunpack.c.l.b16 %v159_v1  ;;  %v1611_v5 = vld [vmem:[%s1600_s14] sm:$0xff]  ;;  %v147_v6 = vld [vmem:[%s1600_s14 + $0x8] sm:$0x1]  ;;  %v377_v7 = vshrl.u32 %v1603_v0, 16  ;;  %v379_v8 = vshll.u32 %v1603_v0, 16  ;;  %v297_v9 = vunpack.c.l.b16 %v153_v4  ;;  %s2359_s4 = scalar_lea.vmem %s2458_s2, %s1507_s29 }
  0x13   : > { %v353_v10 = vshrl.u32 %v1607_v2, 16  ;;  %v162_v11 = vld [vmem:[%s1600_s14 + $0x44] sm:$0x1]  ;;  %v355_v13 = vshll.u32 %v1607_v2, 16  ;;  %v295_v14 = vunpack.c.l.b16 %v147_v6  ;;  %v329_v15 = vshrl.u32 %v1611_v5, 16  ;;  %v1623_v16 = vld [vmem:[%s1600_s14 + $0x3c] sm:$0xff] }
  0x14   : > { %v1618_v12 = vpack.c.b16 %v299_v3, %v299_v3  ;;  %v381_v17 = vrot.slane %v379_v8, 1  ;;  %v1625_v18 = vpack.c.b16 %v297_v9, %v297_v9  ;;  %v331_v19 = vshll.u32 %v1611_v5, 16  ;;  %v156_v25 = vld [vmem:[%s1600_s14 + $0x2c] sm:$0x1]  ;;  %v1637_v30 = vld [vmem:[%s1600_s14 + $0x24] sm:$0xff]  ;;  %v1670_v59 = vld [vmem:[%s1600_s14 + $0x54] sm:$0xff] }
  0x15   : > { %v300_v20 = vunpack.c.l.b16 %v162_v11  ;;  %v357_v22 = vrot.slane %v355_v13, 1  ;;  %v1629_v23 = vpack.c.b16 %v295_v14, %v295_v14  ;;  %v389_v24 = vshrl.u32 %v1623_v16, 16  ;;  %v1643_v39 = vld [vmem:[%s1600_s14 + $0xc] sm:$0xff]  ;;  %v150_v40 = vld [vmem:[%s1600_s14 + $0x14] sm:$0x1]  ;;  %v1651_v45 = vld [vmem:[%s1600_s14 + $0x60] sm:$0xff] }
  0x16   : > { %v384_v21 = vshll.u32 %v1618_v12, 16  ;;  %v382_v26 = vor.u32 %v381_v17, %v377_v7  ;;  %v360_v27 = vshll.u32 %v1625_v18, 16  ;;  %v333_v28 = vrot.slane %v331_v19, 1  ;;  %v171_v46 = vld [vmem:[%s1600_s14 + $0x68] sm:$0x1] }
  0x17   : > { %v1634_v29 = vpack.c.b16 %v300_v20, %v300_v20  ;;  %v358_v32 = vor.u32 %v357_v22, %v353_v10  ;;  %v336_v33 = vshll.u32 %v1629_v23, 16  ;;  %v391_v34 = vshll.u32 %v1623_v16, 16  ;;  %v168_v60 = vld [vmem:[%s1600_s14 + $0x5c] sm:$0x1]  ;;  %v1683_v8 = vld [vmem:[%s1600_s14 + $0x48] sm:$0xff] }
  0x18   : > { %v386_v31 = vrot.slane %v384_v21, 1  ;;  %v362_v35 = vrot.slane %v360_v27, 1  ;;  %v334_v36 = vor.u32 %v333_v28, %v329_v15  ;;  %v298_v38 = vunpack.c.l.b16 %v156_v25  ;;  %v165_v9 = vld [vmem:[%s1600_s14 + $0x50] sm:$0x1]  ;;  %v180_v21 = vld [vmem:[%s1600_s14 + $0x8c] sm:$0x1] }
  0x19   : > { %v396_v37 = vshll.u32 %v1634_v29, 16  ;;  %v338_v42 = vrot.slane %v336_v33, 1  ;;  %v393_v43 = vrot.slane %v391_v34, 1  ;;  %v365_v44 = vshrl.u32 %v1637_v30, 16  ;;  %v1697_v27 = vld [vmem:[%s1600_s14 + $0x84] sm:$0xff]  ;;  %v1704_v34 = vld [vmem:[%s1600_s14 + $0x78] sm:$0xff] }
  0x1a   : > { %v1647_v41 = vsel %vm327_vm0, %v382_v26, %v386_v31  ;;  %v1657_v47 = vsel %vm327_vm0, %v358_v32, %v362_v35  ;;  %v1659_v49 = vpack.c.b16 %v298_v38, %v298_v38  ;;  %v367_v50 = vshll.u32 %v1637_v30, 16 }
  0x1b   : > { %528 = vrot.lane.b32.xlu2 %v1647_v41, %s1563_s15  ;;  %v398_v48 = vrot.slane %v396_v37, 1  ;;  %524 = vrot.lane.b32.xlu1 %v1657_v47, %s1563_s15  ;;  %v339_v51 = vsel %vm327_vm0, %v334_v36, %v338_v42  ;;  %v394_v52 = vor.u32 %v393_v43, %v389_v24  ;;  %v296_v53 = vunpack.c.l.b16 %v150_v40  ;;  %v177_v40 = vld [vmem:[%s1600_s14 + $0x80] sm:$0x1] }
  0x1c   : > { %v341_v54 = vshrl.u32 %v1643_v39, 16  ;;  %520 = vrot.lane.b32.xlu0 %v339_v51, %s1563_s15  ;;  %v369_v55 = vrot.slane %v367_v50, 1  ;;  %v372_v56 = vshll.u32 %v1659_v49, 16  ;;  %v343_v57 = vshll.u32 %v1643_v39, 16 }
  0x1d   : > { %v303_v58 = vunpack.c.l.b16 %v171_v46  ;;  %v1674_v61 = vsel %vm327_vm0, %v394_v52, %v398_v48  ;;  %v1676_v62 = vpack.c.b16 %v296_v53, %v296_v53  ;;  %v425_v63 = vshrl.u32 %v1651_v45, 16  ;;  %v1723_v52 = vld [vmem:[%s1600_s14 + $0x6c] sm:$0xff]  ;;  %v174_v53 = vld [vmem:[%s1600_s14 + $0x74] sm:$0x1] }
  0x1e   : > { %v427_v1 = vshll.u32 %v1651_v45, 16  ;;  %v370_v3 = vor.u32 %v369_v55, %v365_v44  ;;  %v374_v4 = vrot.slane %v372_v56, 1  ;;  %v345_v6 = vrot.slane %v343_v57, 1 }
  0x1f   : > { %v1680_v7 = vpack.c.b16 %v303_v58, %v303_v58  ;;  %v348_v10 = vshll.u32 %v1676_v62, 16  ;;  %v302_v13 = vunpack.c.l.b16 %v168_v60  ;;  %v413_v14 = vshrl.u32 %v1670_v59, 16  ;;  %v1731_v58 = vld [vmem:[%s1600_s14 + $0xa8] sm:$0xff] }
  0x20   : > { %v429_v11 = vrot.slane %v427_v1, 1  ;;  %v1689_v15 = vsel %vm327_vm0, %v370_v3, %v374_v4  ;;  %v346_v17 = vor.u32 %v345_v6, %v341_v54  ;;  %v415_v20 = vshll.u32 %v1670_v59, 16  ;;  %v189_v4 = vld [vmem:[%s1600_s14 + $0xb0] sm:$0x1] }
  0x21   : > { %v432_v19 = vshll.u32 %v1680_v7, 16  ;;  %v350_v22 = vrot.slane %v348_v10, 1  ;;  %v1694_v25 = vpack.c.b16 %v302_v13, %v302_v13  ;;  %v301_v26 = vunpack.c.l.b16 %v165_v9 }
  0x22   : > { %v430_v24 = vor.u32 %v429_v11, %v425_v63  ;;  %v417_v31 = vrot.slane %v415_v20, 1  ;;  %v401_v32 = vshrl.u32 %v1683_v8, 16  ;;  %v403_v33 = vshll.u32 %v1683_v8, 16  ;;  %v1747_v20 = vld [vmem:[%s1600_s14 + $0x9c] sm:$0xff] }
  0x23   : > { %530 = vrot.lane.b32.xlu2 %v1674_v61, %s1563_s15  ;;  %v434_v28 = vrot.slane %v432_v19, 1  ;;  %526 = vrot.lane.b32.xlu1 %v1689_v15, %s1563_s15  ;;  %v1709_v35 = vsel %vm327_vm0, %v346_v17, %v350_v22  ;;  %v420_v36 = vshll.u32 %v1694_v25, 16  ;;  %v1712_v37 = vpack.c.b16 %v301_v26, %v301_v26 }
  0x24   : > { %v306_v38 = vunpack.c.l.b16 %v180_v21  ;;  %522 = vrot.lane.b32.xlu0 %v1709_v35, %s1563_s15  ;;  %v418_v42 = vor.u32 %v417_v31, %v413_v14  ;;  %v405_v43 = vrot.slane %v403_v33, 1  ;;  %v461_v44 = vshrl.u32 %v1697_v27, 16  ;;  %v186_v21 = vld [vmem:[%s1600_s14 + $0xa4] sm:$0x1] }
  0x25   : > { %v422_v46 = vrot.slane %v420_v36, 1  ;;  %v408_v48 = vshll.u32 %v1712_v37, 16  ;;  %v463_v51 = vshll.u32 %v1697_v27, 16  ;;  %v1727_v54 = vsel %vm327_vm0, %v430_v24, %v434_v28 }
  0x26   : > { %v1719_v50 = vpack.c.b16 %v306_v38, %v306_v38  ;;  %v406_v55 = vor.u32 %v405_v43, %v401_v32  ;;  %v305_v56 = vunpack.c.l.b16 %v177_v40  ;;  %v451_v57 = vshll.u32 %v1704_v34, 16  ;;  %v1764_v43 = vld [vmem:[%s1600_s14 + $0x90] sm:$0xff] }
  0x27   : > { %v410_v60 = vrot.slane %v408_v48, 1  ;;  %v465_v63 = vrot.slane %v463_v51, 1  ;;  %v449_v3 = vshrl.u32 %v1704_v34, 16  ;;  %v1737_v6 = vsel %vm327_vm0, %v418_v42, %v422_v46 }
  0x28   : > { %v468_v1 = vshll.u32 %v1719_v50, 16  ;;  %v1739_v9 = vpack.c.b16 %v305_v56, %v305_v56  ;;  %v453_v10 = vrot.slane %v451_v57, 1  ;;  %v304_v11 = vunpack.c.l.b16 %v174_v53 }
  0x29   : > { %v1742_v13 = vsel %vm327_vm0, %v406_v55, %v410_v60  ;;  %v466_v14 = vor.u32 %v465_v63, %v461_v44  ;;  %v437_v17 = vshrl.u32 %v1723_v52, 16  ;;  %v439_v19 = vshll.u32 %v1723_v52, 16  ;;  %v183_v44 = vld [vmem:[%s1600_s14 + $0x98] sm:$0x1] }
  0x2a   : > { %v470_v22 = vrot.slane %v468_v1, 1  ;;  %v456_v24 = vshll.u32 %v1739_v9, 16  ;;  %v1753_v26 = vpack.c.b16 %v304_v11, %v304_v11  ;;  %v309_v28 = vunpack.c.l.b16 %v189_v4 }
  0x2b   : > { %536 = vrot.lane.b32.xlu2 %v1727_v54, %s1563_s15  ;;  %534 = vrot.lane.b32.xlu1 %v1737_v6, %s1563_s15  ;;  %v454_v31 = vor.u32 %v453_v10, %v449_v3  ;;  %v441_v32 = vrot.slane %v439_v19, 1  ;;  %v499_v33 = vshll.u32 %v1731_v58, 16  ;;  %v308_v42 = vunpack.c.l.b16 %v186_v21 }
  0x2c   : > { %532 = vrot.lane.b32.xlu0 %v1742_v13, %s1563_s15  ;;  %v458_v36 = vrot.slane %v456_v24, 1  ;;  %v444_v38 = vshll.u32 %v1753_v26, 16  ;;  %v1761_v40 = vpack.c.b16 %v309_v28, %v309_v28  ;;  %v487_v48 = vshll.u32 %v1747_v20, 16 }
  0x2d   : > { %v442_v46 = vor.u32 %v441_v32, %v437_v17  ;;  %v1769_v51 = vsel %vm327_vm0, %v466_v14, %v470_v22  ;;  %v497_v55 = vshrl.u32 %v1731_v58, 16  ;;  %v1772_v56 = vpack.c.b16 %v308_v42, %v308_v42  ;;  %v192_v14 = vld [vmem:[%s1600_s14 + $0xbc] sm:$0x1]  ;;  %v1789_v22 = vld [vmem:[%s1600_s14 + $0xb4] sm:$0xff] }
  0x2e   : > { %v446_v53 = vrot.slane %v444_v38, 1  ;;  %v501_v57 = vrot.slane %v499_v33, 1  ;;  %v504_v60 = vshll.u32 %v1761_v40, 16  ;;  %v485_v63 = vshrl.u32 %v1747_v20, 16 }
  0x2f   : > { %v307_v1 = vunpack.c.l.b16 %v183_v44  ;;  %v1777_v3 = vsel %vm327_vm0, %v454_v31, %v458_v36  ;;  %v489_v4 = vrot.slane %v487_v48, 1  ;;  %v492_v10 = vshll.u32 %v1772_v56, 16 }
  0x30   : > { %v475_v11 = vshll.u32 %v1764_v43, 16  ;;  %v1783_v17 = vsel %vm327_vm0, %v442_v46, %v446_v53  ;;  %v473_v21 = vshrl.u32 %v1764_v43, 16  ;;  %v502_v28 = vor.u32 %v501_v57, %v497_v55 }
  0x31   : > { %2462 = vst [vmem:[#allocation2_spill] sm:$0xff] %v1783_v17  ;;  %v1785_v19 = vpack.c.b16 %v307_v1, %v307_v1  ;;  %v506_v31 = vrot.slane %v504_v60, 1  ;;  %v310_v33 = vunpack.c.l.b16 %v192_v14  ;;  %v490_v36 = vor.u32 %v489_v4, %v485_v63 }
  0x32   : > { %v477_v24 = vrot.slane %v475_v11, 1  ;;  %v494_v38 = vrot.slane %v492_v10, 1  ;;  %v511_v48 = vshll.u32 %v1789_v22, 16  ;;  %v509_v60 = vshrl.u32 %v1789_v22, 16 }
  0x33   : > { %542 = vrot.lane.b32.xlu2 %v1769_v51, %s1563_s15  ;;  %540 = vrot.lane.b32.xlu1 %v1777_v3, %s1563_s15  ;;  %v480_v32 = vshll.u32 %v1785_v19, 16  ;;  %v1798_v46 = vpack.c.b16 %v310_v33, %v310_v33  ;;  %v1802_v53 = vsel %vm327_vm0, %v502_v28, %v506_v31  ;;  %v556_v4 = vrot.slane %v1643_v39, 1 }
  0x34   : > { %538 = vrot.lane.b32.xlu0 %v1783_v17, %s1563_s15  ;;  %v478_v42 = vor.u32 %v477_v24, %v473_v21  ;;  %v1805_v55 = vsel %vm327_vm0, %v490_v36, %v494_v38  ;;  %v513_v1 = vrot.slane %v511_v48, 1  ;;  %v557_v10 = vrot.slane %v1676_v62, 1 }
  0x35   : > { %v482_v44 = vrot.slane %v480_v32, 1  ;;  %2463 = vst [vmem:[#allocation3_spill] sm:$0xff] %v1805_v55  ;;  %v516_v63 = vshll.u32 %v1798_v46, 16  ;;  %v553_v11 = vrot.slane %v1611_v5, 1  ;;  %v554_v14 = vrot.slane %v1629_v23, 1 }
  0x36   : > { %v514_v21 = vor.u32 %v513_v1, %v509_v60  ;;  %v1823_v28 = vsel %vm552_vm1, %v556_v4, %v557_v10  ;;  %v565_v62 = vrot.slane %v1603_v0, 1  ;;  %v566_v23 = vrot.slane %v1618_v12, 1 }
  0x37   : > { %v1808_v57 = vsel %vm327_vm0, %v478_v42, %v482_v44  ;;  %v518_v24 = vrot.slane %v516_v63, 1  ;;  %v555_v31 = vsel %vm552_vm1, %v553_v11, %v554_v14  ;;  %v562_v33 = vrot.slane %v1637_v30, 1 }
  0x38   : > { %v563_v36 = vrot.slane %v1659_v49, 1  ;;  %v559_v38 = vrot.slane %v1607_v2, 1  ;;  %v560_v42 = vrot.slane %v1625_v18, 1  ;;  %v1841_v44 = vsel %vm552_vm1, %v565_v62, %v566_v23 }
  0x39   : > { %v1827_v32 = vsel %vm327_vm0, %v514_v21, %v518_v24  ;;  %v574_v12 = vrot.slane %v1670_v59, 1  ;;  %v575_v49 = vrot.slane %v1694_v25, 1  ;;  %v571_v18 = vrot.slane %v1683_v8, 1 }
  0x3a   : > { %v1844_v48 = vsel %vm552_vm1, %v562_v33, %v563_v36  ;;  %v1847_v60 = vsel %vm552_vm1, %v559_v38, %v560_v42  ;;  %v572_v1 = vrot.slane %v1712_v37, 1  ;;  %v568_v63 = vrot.slane %v1623_v16, 1 }
  0x3b   : > { %548 = vrot.lane.b32.xlu2 %v1802_v53, %s1563_s15  ;;  %546 = vrot.lane.b32.xlu1 %v1805_v55, %s1563_s15  ;;  %v569_v4 = vrot.slane %v1634_v29, 1  ;;  %v1862_v10 = vsel %vm552_vm1, %v574_v12, %v575_v49  ;;  %v583_v25 = vrot.slane %v1704_v34, 1  ;;  %v584_v37 = vrot.slane %v1739_v9, 1 }
  0x3c   : > { %544 = vrot.lane.b32.xlu0 %v1808_v57, %s1563_s15  ;;  %v1865_v11 = vsel %vm552_vm1, %v571_v18, %v572_v1  ;;  %v580_v29 = vrot.slane %v1723_v52, 1  ;;  %v581_v21 = vrot.slane %v1753_v26, 1  ;;  %v577_v24 = vrot.slane %v1651_v45, 1 }
  0x3d   : > { %v1868_v14 = vsel %vm552_vm1, %v568_v63, %v569_v4  ;;  %v1883_v62 = vsel %vm552_vm1, %v583_v25, %v584_v37  ;;  %v592_v9 = vrot.slane %v1747_v20, 1  ;;  %v593_v26 = vrot.slane %v1772_v56, 1 }
  0x3e   : > { %v1886_v23 = vsel %vm552_vm1, %v580_v29, %v581_v21  ;;  %v590_v36 = vrot.slane %v1785_v19, 1  ;;  %v586_v38 = vrot.slane %v1697_v27, 1  ;;  %v587_v42 = vrot.slane %v1719_v50, 1 }
  0x3f   : > { %2464 = vst [vmem:[#allocation4_spill] sm:$0xff] %v1886_v23  ;;  %v1904_v12 = vsel %vm552_vm1, %v592_v9, %v593_v26  ;;  %v598_v50 = vrot.slane %v1789_v22, 1  ;;  %v599_v56 = vrot.slane %v1798_v46, 1  ;;  %v595_v19 = vrot.slane %v1731_v58, 1 }
  0x40   : > { %v1910_v18 = vsel %vm552_vm1, %v586_v38, %v587_v42  ;;  %v596_v1 = vrot.slane %v1761_v40, 1 }
  0x41   : > { %v1923_v63 = vsel %vm552_vm1, %v598_v50, %v599_v56 }
  0x42   : > { %v1926_v4 = vsel %vm552_vm1, %v595_v19, %v596_v1 }
  0x43   : > { %603 = vrot.lane.b32.xlu2 %v1823_v28, %s1564_s16  ;;  %601 = vrot.lane.b32.xlu1 %v555_v31, %s1564_s16  ;;  %v578_v31 = vrot.slane %v1680_v7, 1  ;;  %v589_v7 = vrot.slane %v1764_v43, 1 }
  0x44   : > { %550 = vrot.lane.b32.xlu0 %v1827_v32, %s1563_s15 }
  0x45   : > { %v1889_v33 = vsel %vm552_vm1, %v577_v24, %v578_v31  ;;  %v1907_v49 = vsel %vm552_vm1, %v589_v7, %v590_v36  ;;  %v1952_v24 = vld [vmem:[%s1600_s14 + $0xc0] sm:$0xff] }
  0x4b   : > { %609 = vrot.lane.b32.xlu2 %v1841_v44, %s1564_s16  ;;  %607 = vrot.lane.b32.xlu1 %v1844_v48, %s1564_s16 }
  0x4c   : > { %605 = vrot.lane.b32.xlu0 %v1847_v60, %s1564_s16 }
  0x53   : > { %615 = vrot.lane.b32.xlu2 %v1862_v10, %s1564_s16  ;;  %613 = vrot.lane.b32.xlu1 %v1865_v11, %s1564_s16 }
  0x54   : > { %611 = vrot.lane.b32.xlu0 %v1868_v14, %s1564_s16 }
  0x5b   : > { %621 = vrot.lane.b32.xlu2 %v1883_v62, %s1564_s16  ;;  %619 = vrot.lane.b32.xlu1 %v1886_v23, %s1564_s16 }
  0x5c   : > { %617 = vrot.lane.b32.xlu0 %v1889_v33, %s1564_s16 }
  0x63   : > { %627 = vrot.lane.b32.xlu2 %v1904_v12, %s1564_s16  ;;  %625 = vrot.lane.b32.xlu1 %v1907_v49, %s1564_s16 }
  0x64   : > { %623 = vrot.lane.b32.xlu0 %v1910_v18, %s1564_s16 }
  0x6b   : > { %638 = vrot.lane.b32.xlu2 %v1643_v39, %s1565_s17  ;;  %631 = vrot.lane.b32.xlu1 %v1923_v63, %s1564_s16 }
  0x6c   : > { %629 = vrot.lane.b32.xlu0 %v1926_v4, %s1564_s16 }
  0x73   : > { %644 = vrot.lane.b32.xlu2 %v1603_v0, %s1565_s17  ;;  %642 = vrot.lane.b32.xlu1 %v1637_v30, %s1565_s17 }
  0x74   : > { %640 = vrot.lane.b32.xlu0 %v1607_v2, %s1565_s17 }
  0x75   : > { %v529_v40 = vpop.permute.xlu2 %528 }
  0x76   : > { %v881_v56 = vsel %vm871_vm3, %v1603_v0, %v529_v40 }
  0x7b   : > { %650 = vrot.lane.b32.xlu2 %v1670_v59, %s1565_s17  ;;  %648 = vrot.lane.b32.xlu1 %v1683_v8, %s1565_s17 }
  0x7c   : > { %646 = vrot.lane.b32.xlu0 %v1623_v16, %s1565_s17 }
  0x7d   : > { %v1939_v46 = vpop.permute.xlu2 %530 }
  0x83   : > { %656 = vrot.lane.b32.xlu2 %v1704_v34, %s1565_s17  ;;  %654 = vrot.lane.b32.xlu1 %v1723_v52, %s1565_s17 }
  0x84   : > { %652 = vrot.lane.b32.xlu0 %v1651_v45, %s1565_s17 }
  0x85   : > { %v1944_v25 = vpop.permute.xlu2 %536 }
  0x8b   : > { %662 = vrot.lane.b32.xlu2 %v1747_v20, %s1565_s17  ;;  %660 = vrot.lane.b32.xlu1 %v1764_v43, %s1565_s17 }
  0x8c   : > { %658 = vrot.lane.b32.xlu0 %v1697_v27, %s1565_s17 }
  0x8d   : > { %v1949_v37 = vpop.permute.xlu2 %542  ;;  %v525_v29 = vpop.permute.xlu1 %524 }
  0x8e   : > { %v521_v21 = vpop.permute.xlu0 %520 }
  0x93   : > { %668 = vrot.lane.b32.xlu2 %v1952_v24, %s1565_s17  ;;  %666 = vrot.lane.b32.xlu1 %v1789_v22, %s1565_s17 }
  0x94   : > { %664 = vrot.lane.b32.xlu0 %v1731_v58, %s1565_s17 }
  0x95   : > { %v1957_v31 = vpop.permute.xlu2 %548  ;;  %v527_v9 = vpop.permute.xlu1 %526 }
  0x96   : > { %v523_v26 = vpop.permute.xlu0 %522 }
  0x97   : > { %v875_v7 = vsel %vm871_vm3, %v1643_v39, %v523_v26 }
  0x9b   : > { %701 = vrot.lane.b32.xlu2 %v1783_v17, %s1566_s18  ;;  %687 = vrot.lane.b32.xlu1 %v1657_v47, %s1566_s18 }
  0x9c   : > { %685 = vrot.lane.b32.xlu0 %v1709_v35, %s1566_s18 }
  0x9d   : > { %v604_v36 = vpop.permute.xlu2 %603  ;;  %v535_v38 = vpop.permute.xlu1 %534 }
  0x9e   : > { %v1968_v42 = vsel %vm904_vm2, %v875_v7, %v604_v36  ;;  %v533_v50 = vpop.permute.xlu0 %532  ;;  %v887_v40 = vsel %vm871_vm3, %v1670_v59, %v535_v38 }
  0xa3   : > { %744 = vrot.lane.b32.xlu2 %v1904_v12, %s1567_s19  ;;  %736 = vrot.lane.b32.xlu1 %v1886_v23, %s1567_s19  ;;  %v873_v23 = vsel %vm871_vm3, %v1611_v5, %v521_v21  ;;  %v879_v21 = vsel %vm871_vm3, %v1637_v30, %v527_v9 }
  0xa4   : > { %709 = vrot.lane.b32.xlu0 %v1805_v55, %s1566_s18 }
  0xa5   : > { %v610_v39 = vpop.permute.xlu2 %609  ;;  %v541_v35 = vpop.permute.xlu1 %540 }
  0xa6   : > { %v1979_v19 = vsel %vm904_vm2, %v881_v56, %v610_v39  ;;  %v539_v1 = vpop.permute.xlu0 %538  ;;  %v893_v39 = vsel %vm871_vm3, %v1704_v34, %v541_v35 }
  0xab   : > { %820 = vrot.lane.b32.xlu2 %v1777_v3, %s1568_s20  ;;  %781 = vrot.lane.b32.xlu1 %v1731_v58, %s1569_s21 }
  0xac   : > { %773 = vrot.lane.b32.xlu0 %v1704_v34, %s1569_s21 }
  0xad   : > { %v616_v26 = vpop.permute.xlu2 %615  ;;  %v547_v7 = vpop.permute.xlu1 %546 }
  0xae   : > { %v1990_v36 = vsel %vm904_vm2, %v887_v40, %v616_v26  ;;  %v545_v56 = vpop.permute.xlu0 %544  ;;  %v899_v34 = vsel %vm871_vm3, %v1747_v20, %v547_v7  ;;  %v885_v7 = vsel %vm871_vm3, %v1683_v8, %v533_v50 }
  0xb3   : > { %863 = vrot.lane.b32.xlu2 %v1926_v4, %s1570_s22  ;;  %855 = vrot.lane.b32.xlu1 %v1883_v62, %s1570_s22 }
  0xb4   : > { %828 = vrot.lane.b32.xlu0 %v1802_v53, %s1568_s20 }
  0xb5   : > { %v622_v38 = vpop.permute.xlu2 %621  ;;  %v602_v26 = vpop.permute.xlu1 %601 }
  0xb6   : > { %v2003_v40 = vsel %vm904_vm2, %v893_v39, %v622_v38  ;;  %v906_v17 = vsel %vm904_vm2, %v873_v23, %v602_v26  ;;  %v551_v55 = vpop.permute.xlu0 %550  ;;  %v877_v39 = vsel %vm871_vm3, %v1607_v2, %v525_v29 }
  0xbb   : > { %728 = vrot.lane.b32.xlu2 %v1868_v14, %s1567_s19  ;;  %720 = vrot.lane.b32.xlu1 %v1823_v28, %s1567_s19 }
  0xbc   : > { %693 = vrot.lane.b32.xlu0 %v1674_v61, %s1566_s18 }
  0xbd   : > { %v628_v5 = vpop.permute.xlu2 %627  ;;  %v608_v23 = vpop.permute.xlu1 %607 }
  0xbe   : > { %v2017_v35 = vsel %vm904_vm2, %v899_v34, %v628_v5  ;;  %v912_v38 = vsel %vm904_vm2, %v879_v21, %v608_v23  ;;  %v606_v28 = vpop.permute.xlu0 %605  ;;  %v883_v5 = vsel %vm871_vm3, %v1623_v16, %v1939_v46  ;;  %v889_v46 = vsel %vm871_vm3, %v1651_v45, %v1944_v25 }
  0xbf   : > { %v910_v26 = vsel %vm904_vm2, %v877_v39, %v606_v28 }
  0xc3   : > { %804 = vrot.lane.b32.xlu2 %v1657_v47, %s1568_s20  ;;  %765 = vrot.lane.b32.xlu1 %v1683_v8, %s1569_s21  ;;  %v891_v8 = vsel %vm871_vm3, %v1723_v52, %v539_v1 }
  0xc4   : > { %757 = vrot.lane.b32.xlu0 %v1607_v2, %s1569_s21 }
  0xc5   : > { %v639_v9 = vpop.permute.xlu2 %638  ;;  %v614_v34 = vpop.permute.xlu1 %613 }
  0xc6   : > { %v2032_v29 = vsel %vm937_vm4, %v906_v17, %v639_v9  ;;  %v918_v47 = vsel %vm904_vm2, %v885_v7, %v614_v34  ;;  %v612_v21 = vpop.permute.xlu0 %611  ;;  %v895_v7 = vsel %vm871_vm3, %v1697_v27, %v1949_v37 }
  0xc7   : > { %v916_v23 = vsel %vm904_vm2, %v883_v5, %v612_v21 }
  0xcb   : > { %847 = vrot.lane.b32.xlu2 %v1865_v11, %s1570_s22  ;;  %839 = vrot.lane.b32.xlu1 %v1847_v60, %s1570_s22 }
  0xcc   : > { %812 = vrot.lane.b32.xlu0 %v1742_v13, %s1568_s20 }
  0xcd   : > { %v645_v2 = vpop.permute.xlu2 %644  ;;  %v620_v17 = vpop.permute.xlu1 %619 }
  0xce   : > { %v2048_v16 = vsel %vm937_vm4, %v912_v38, %v645_v2  ;;  %v924_v50 = vsel %vm904_vm2, %v891_v8, %v620_v17  ;;  %v618_v39 = vpop.permute.xlu0 %617  ;;  %v897_v38 = vsel %vm871_vm3, %v1764_v43, %v545_v56  ;;  %v903_v56 = vsel %vm871_vm3, %v1789_v22, %v551_v55 }
  0xcf   : > { %v2055_v28 = vsel %vm904_vm2, %v889_v46, %v618_v39 }
  0xd3   : > { %738 = vrot.lane.b32.xlu2 %v1883_v62, %s1567_s19  ;;  %711 = vrot.lane.b32.xlu1 %v1802_v53, %s1566_s18 }
  0xd4   : > { %703 = vrot.lane.b32.xlu0 %v1777_v3, %s1566_s18 }
  0xd5   : > { %v651_v1 = vpop.permute.xlu2 %650  ;;  %v626_v9 = vpop.permute.xlu1 %625 }
  0xd6   : > { %v2066_v25 = vsel %vm937_vm4, %v918_v47, %v651_v1  ;;  %v2072_v62 = vsel %vm904_vm2, %v897_v38, %v626_v9  ;;  %v624_v34 = vpop.permute.xlu0 %623  ;;  %v901_v47 = vsel %vm871_vm3, %v1731_v58, %v1957_v31 }
  0xd7   : > { %v928_v53 = vsel %vm904_vm2, %v895_v7, %v624_v34 }
  0xdb   : > { %783 = vrot.lane.b32.xlu2 %v1789_v22, %s1569_s21  ;;  %775 = vrot.lane.b32.xlu1 %v1697_v27, %s1569_s21 }
  0xdc   : > { %746 = vrot.lane.b32.xlu0 %v1926_v4, %s1567_s19 }
  0xdd   : > { %v657_v3 = vpop.permute.xlu2 %656  ;;  %v632_v5 = vpop.permute.xlu1 %631 }
  0xde   : > { %v2084_v37 = vsel %vm937_vm4, %v924_v50, %v657_v3  ;;  %v936_v21 = vsel %vm904_vm2, %v903_v56, %v632_v5  ;;  %v630_v2 = vpop.permute.xlu0 %629  ;;  %v1527_v56 = vld [vmem:[%s2457_s1 + $0x8] sm:$0xff]  ;;  %v676_v5 = vshll.u32 %v1952_v24, 16 }
  0xdf   : > { %v934_v27 = vsel %vm904_vm2, %v901_v47, %v630_v2 }
  0xe3   : > { %857 = vrot.lane.b32.xlu2 %v1910_v18, %s1570_s22  ;;  %830 = vrot.lane.b32.xlu1 %v1827_v32, %s1568_s20 }
  0xe4   : > { %822 = vrot.lane.b32.xlu0 %v1769_v51, %s1568_s20 }
  0xe5   : > { %v2097_v22 = vpop.permute.xlu2 %662  ;;  %v643_v55 = vpop.permute.xlu1 %642 }
  0xe6   : > { %v2100_v4 = vsel %vm937_vm4, %v910_v26, %v643_v55  ;;  %v641_v58 = vpop.permute.xlu0 %640  ;;  %v674_v55 = vshrl.u32 %v1952_v24, 16 }
  0xe7   : > { %v2104_v31 = vsel %vm937_vm4, %v1968_v42, %v641_v58  ;;  %v678_v58 = vrot.slane %v676_v5, 1 }
  0xeb   : > { %722 = vrot.lane.b32.xlu2 %v1847_v60, %s1567_s19  ;;  %695 = vrot.lane.b32.xlu1 %v1742_v13, %s1566_s18 }
  0xec   : > { %865 = vrot.lane.b32.xlu0 %v1923_v63, %s1570_s22 }
  0xed   : > { %v669_v8 = vpop.permute.xlu2 %668  ;;  %v649_v26 = vpop.permute.xlu1 %648 }
  0xee   : > { %v2113_v17 = vsel %vm937_vm4, %v936_v21, %v669_v8  ;;  %v2116_v46 = vsel %vm937_vm4, %v916_v23, %v649_v26  ;;  %v647_v50 = vpop.permute.xlu0 %646  ;;  %v679_v26 = vor.u32 %v678_v58, %v674_v55  ;;  %v198_v58 = vld [vmem:[%s1600_s14 + $0xd4] sm:$0x1] }
  0xef   : > { %v2120_v42 = vsel %vm937_vm4, %v1979_v19, %v647_v50  ;;  %v1139_v19 = vld [vmem:[%s2457_s1 + $0x10] sm:$0x3] }
  0xf3   : > { %767 = vrot.lane.b32.xlu2 %v1670_v59, %s1569_s21  ;;  %759 = vrot.lane.b32.xlu1 %v1637_v30, %s1569_s21  ;;  %v1149_v59 = vunpack.c.l.b16 %v1139_v19 }
  0xf4   : > { %730 = vrot.lane.b32.xlu0 %v1865_v11, %s1567_s19 }
  0xf5   : > { %v2128_v13 = vpop.permute.xlu2 %701  ;;  %v2130_v60 = vpop.permute.xlu1 %654  ;;  %v1152_v30 = vpack.c.b16 %v1149_v59, %v1149_v59 }
  0xf6   : > { %v653_v23 = vpop.permute.xlu0 %652 }
  0xf7   : > { %v2134_v39 = vsel %vm937_vm4, %v1990_v36, %v653_v23  ;;  %v195_v36 = vld [vmem:[%s1600_s14 + $0xc8] sm:$0x1]  ;;  %v1190_v1 = vsel %vm1188_vm5, %v1152_v30, 0 }
  0xf8   : > { %1529 = vmatpush.bf16.msra.mxu2 %v1190_v1  ;;  %1530 = vmatpush.bf16.msra.mxu3 %v1190_v1  ;;  %v671_v3 = vunpack.c.l.b16 %v195_v36 }
  0xf9   : > { %1197 = vmatpush.bf16.msra.mxu0 %v1190_v1  ;;  %1528 = vmatpush.bf16.msra.mxu1 %v1190_v1 }
  0xfb   : > { %841 = vrot.lane.b32.xlu2 %v1844_v48, %s1570_s22  ;;  %814 = vrot.lane.b32.xlu1 %v1737_v6, %s1568_s20 }
  0xfc   : > { %806 = vrot.lane.b32.xlu0 %v1689_v15, %s1568_s20  ;;  %1532 = vmatpush.bf16.msra.mxu2 %v1527_v56 }
  0xfd   : > { %v2145_v11 = vpop.permute.xlu2 %744  ;;  %v661_v38 = vpop.permute.xlu1 %660  ;;  %1533 = vmatpush.bf16.msra.mxu3 %v1527_v56  ;;  %1198 = vmatpush.bf16.msra.mxu0 %v1527_v56 }
  0xfe   : > { %v2149_v9 = vsel %vm937_vm4, %v928_v53, %v661_v38  ;;  %v659_v7 = vpop.permute.xlu0 %658  ;;  %v672_v53 = vpack.c.b16 %v671_v3, %v671_v3  ;;  %1531 = vmatpush.bf16.msra.mxu1 %v1527_v56 }
  0xff   : > { %v2153_v34 = vsel %vm937_vm4, %v2003_v40, %v659_v7  ;;  %v1526_v40 = vld [vmem:[%s2457_s1] sm:$0xff] }
 0x100   : > { %1535 = vmatpush.bf16.msra.mxu2 %v1526_v40  ;;  %v681_v8 = vshll.u32 %v672_v53, 16 }
 0x101   : > { %1536 = vmatpush.bf16.msra.mxu3 %v1526_v40  ;;  %1199 = vmatpush.bf16.msra.mxu0 %v1526_v40 }
 0x102   : > { %1534 = vmatpush.bf16.msra.mxu1 %v1526_v40 }
 0x103   : > { %713 = vrot.lane.b32.xlu2 %v1827_v32, %s1566_s18  ;;  %705 = vrot.lane.b32.xlu1 %v1769_v51, %s1566_s18 }
 0x104   : > { %849 = vrot.lane.b32.xlu0 %v1862_v10, %s1570_s22 }
 0x105   : > { %v821_v47 = vpop.permute.xlu2 %820  ;;  %v667_v21 = vpop.permute.xlu1 %666 }
 0x106   : > { %v2169_v32 = vsel %vm937_vm4, %v934_v27, %v667_v21  ;;  %v665_v2 = vpop.permute.xlu0 %664  ;;  %v683_v27 = vrot.slane %v681_v8, 1  ;;  %v1525_v8 = vld [vmem:[%s1600_s14 + $0xcc] sm:$0xff] }
 0x107   : > { %v2173_v51 = vsel %vm937_vm4, %v2017_v35, %v665_v2 }
 0x108   : > { %v684_v59 = vsel %vm327_vm0, %v679_v26, %v683_v27  ;;  %v790_v26 = vunpack.c.l.b16 %v198_v58 }
 0x10b   : > { %777 = vrot.lane.b32.xlu2 %v1764_v43, %s1569_s21  ;;  %748 = vrot.lane.b32.xlu1 %v1923_v63, %s1567_s19  ;;  %v718_v63 = vrot.slane %v672_v53, 1 }
 0x10c   : > { %740 = vrot.lane.b32.xlu0 %v1910_v18, %s1567_s19  ;;  %v717_v18 = vrot.slane %v1952_v24, 1 }
 0x10d   : > { %v864_v50 = vpop.permute.xlu2 %863  ;;  %v688_v35 = vpop.permute.xlu1 %687 }
 0x10e   : > { %v2184_v23 = vsel %vm970_vm6, %v2104_v31, %v688_v35  ;;  %v686_v19 = vpop.permute.xlu0 %685  ;;  %v2196_v31 = vsel %vm552_vm1, %v717_v18, %v718_v63  ;;  %v791_v63 = vpack.c.b16 %v790_v26, %v790_v26 }
 0x113   : > { %832 = vrot.lane.b32.xlu2 %v684_v59, %s1568_s20  ;;  %824 = vrot.lane.b32.xlu1 %v1808_v57, %s1568_s20 }
 0x114   : > { %785 = vrot.lane.b32.xlu0 %v1952_v24, %s1569_s21  ;;  %v955_v24 = vsel %vm937_vm4, %v2055_v28, %v2130_v60 }
 0x115   : > { %v2192_v43 = vpop.permute.xlu2 %728  ;;  %v737_v30 = vpop.permute.xlu1 %736  ;;  %v988_v3 = vsel %vm970_vm6, %v955_v24, %v2128_v13 }
 0x116   : > { %v710_v36 = vpop.permute.xlu0 %709  ;;  %v1021_v56 = vsel %vm1003_vm7, %v988_v3, %v737_v30  ;;  %v800_v3 = vshll.u32 %v791_v63, 16 }
 0x11b   : > { %689 = vrot.lane.b32.xlu2 %v1689_v15, %s1566_s18  ;;  %867 = vrot.lane.b32.xlu1 %v2196_v31, %s1570_s22  ;;  %v963_v15 = vsel %vm937_vm4, %v2072_v62, %v2097_v22 }
 0x11c   : > { %859 = vrot.lane.b32.xlu0 %v1907_v49, %s1570_s22  ;;  %v996_v53 = vsel %vm970_vm6, %v963_v15, %v710_v36 }
 0x11d   : > { %v805_v1 = vpop.permute.xlu2 %804  ;;  %v782_v38 = vpop.permute.xlu1 %781  ;;  %v1029_v62 = vsel %vm1003_vm7, %v996_v53, %v2145_v11 }
 0x11e   : > { %v774_v7 = vpop.permute.xlu0 %773  ;;  %v1062_v60 = vsel %vm1036_vm8, %v1029_v62, %v782_v38 }
 0x11f   : > { %v1054_v5 = vsel %vm1036_vm8, %v1021_v56, %v774_v7 }
 0x120   : > { %v1087_v13 = vsel %vm1069_vm9, %v1054_v5, %v821_v47 }
 0x123   : > { %732 = vrot.lane.b32.xlu2 %v1862_v10, %s1567_s19  ;;  %724 = vrot.lane.b32.xlu1 %v1844_v48, %s1567_s19 }
 0x124   : > { %697 = vrot.lane.b32.xlu0 %v1737_v6, %s1566_s18 }
 0x125   : > { %v848_v28 = vpop.permute.xlu2 %847  ;;  %v856_v22 = vpop.permute.xlu1 %855 }
 0x126   : > { %v829_v40 = vpop.permute.xlu0 %828  ;;  %v1120_v10 = vsel %vm1102_vm10, %v1087_v13, %v856_v22  ;;  %v837_v22 = vrot.slane %v791_v63, 1 }
 0x127   : > { %v1095_v48 = vsel %vm1069_vm9, %v1062_v60, %v829_v40  ;;  %1497 = vmatmul.msk.bf16.vlgmr.msra.gmra.mxu2 %vm1155_vm11, %v1120_v10 }
 0x128   : > { %v1128_v6 = vsel %vm1102_vm10, %v1095_v48, %v864_v50 }
 0x129   : > { %1501 = vmatmul.msk.bf16.vlgmr.msra.gmra.mxu3 %vm1155_vm11, %v1128_v6 }
 0x12b   : > { %808 = vrot.lane.b32.xlu2 %v1647_v41, %s1568_s20  ;;  %769 = vrot.lane.b32.xlu1 %v1651_v45, %s1569_s21 }
 0x12c   : > { %761 = vrot.lane.b32.xlu0 %v1603_v0, %s1569_s21  ;;  %v972_v0 = vsel %vm970_vm6, %v2032_v29, %v686_v19  ;;  %v795_v29 = vshll.u32 %v1525_v8, 16 }
 0x12d   : > { %v739_v11 = vpop.permute.xlu2 %738  ;;  %v721_v47 = vpop.permute.xlu1 %720 }
 0x12e   : > { %v694_v21 = vpop.permute.xlu0 %693  ;;  %v1005_v27 = vsel %vm1003_vm7, %v972_v0, %v721_v47  ;;  %v797_v7 = vrot.slane %v795_v29, 1 }
 0x12f   : > { %v980_v50 = vsel %vm970_vm6, %v2120_v42, %v694_v21 }
 0x130   : > { %v1013_v19 = vsel %vm1003_vm7, %v980_v50, %v2192_v43 }
 0x133   : > { %851 = vrot.lane.b32.xlu2 %v1889_v33, %s1570_s22  ;;  %843 = vrot.lane.b32.xlu1 %v1841_v44, %s1570_s22 }
 0x134   : > { %816 = vrot.lane.b32.xlu0 %v1727_v54, %s1568_s20 }
 0x135   : > { %v2242_v2 = vpop.permute.xlu2 %783  ;;  %v766_v55 = vpop.permute.xlu1 %765 }
 0x136   : > { %v758_v45 = vpop.permute.xlu0 %757  ;;  %v1046_v42 = vsel %vm1036_vm8, %v1013_v19, %v766_v55 }
 0x137   : > { %v1038_v35 = vsel %vm1036_vm8, %v1005_v27, %v758_v45 }
 0x138   : > { %v1071_v36 = vsel %vm1069_vm9, %v1038_v35, %v805_v1  ;;  %v802_v1 = vrot.slane %v800_v3, 1 }
 0x13b   : > { %742 = vrot.lane.b32.xlu2 %v1907_v49, %s1567_s19  ;;  %715 = vrot.lane.b32.xlu1 %v684_v59, %s1566_s18  ;;  %v793_v59 = vshrl.u32 %v1525_v8, 16 }
 0x13c   : > { %707 = vrot.lane.b32.xlu0 %v1808_v57, %s1566_s18 }
 0x13d   : > { %v858_v18 = vpop.permute.xlu2 %857  ;;  %v840_v30 = vpop.permute.xlu1 %839  ;;  %v798_v43 = vor.u32 %v797_v7, %v793_v59 }
 0x13e   : > { %v813_v24 = vpop.permute.xlu0 %812  ;;  %v1104_v38 = vsel %vm1102_vm10, %v1071_v36, %v840_v30 }
 0x13f   : > { %v1079_v49 = vsel %vm1069_vm9, %v1046_v42, %v813_v24  ;;  %1489 = vmatmul.msk.bf16.vlgmr.msra.gmra.mxu0 %vm1155_vm11, %v1104_v38  ;;  %v803_v5 = vsel %vm327_vm0, %v798_v43, %v802_v1 }
 0x140   : > { %v1112_v57 = vsel %vm1102_vm10, %v1079_v49, %v848_v28  ;;  %v2465_v28 = vld [vmem:[#allocation3_spill] sm:$0xff] }
 0x141   : > { %1493 = vmatmul.msk.bf16.vlgmr.msra.gmra.mxu1 %vm1155_vm11, %v1112_v57 }
 0x143   : > { %787 = vrot.lane.b32.xlu2 %v1525_v8, %s1569_s21  ;;  %779 = vrot.lane.b32.xlu1 %v1747_v20, %s1569_s21  ;;  %v836_v20 = vrot.slane %v1525_v8, 1  ;;  %v2466_v8 = vld [vmem:[#allocation2_spill] sm:$0xff] }
 0x144   : > { %750 = vrot.lane.b32.xlu0 %v2196_v31, %s1567_s19 }
 0x145   : > { %v723_v15 = vpop.permute.xlu2 %722  ;;  %v712_v56 = vpop.permute.xlu1 %711  ;;  %v838_v60 = vsel %vm552_vm1, %v836_v20, %v837_v22 }
 0x146   : > { %v704_v53 = vpop.permute.xlu0 %703  ;;  %v1007_v27 = vsel %vm1003_vm7, %v2184_v23, %v723_v15 }
 0x147   : > { %v990_v40 = vsel %vm970_vm6, %v2084_v37, %v704_v53  ;;  %v998_v37 = vsel %vm970_vm6, %v2173_v51, %v712_v56 }
 0x14b   : > { %861 = vrot.lane.b32.xlu2 %v1904_v12, %s1570_s22  ;;  %834 = vrot.lane.b32.xlu1 %v803_v5, %s1568_s20  ;;  %v1023_v12 = vsel %vm1003_vm7, %v990_v40, %v739_v11 }
 0x14c   : > { %826 = vrot.lane.b32.xlu0 %v2465_v28, %s1568_s20 }
 0x14d   : > { %v776_v62 = vpop.permute.xlu1 %775  ;;  %v768_v31 = vpop.permute.xlu2 %767 }
 0x14e   : > { %v747_v13 = vpop.permute.xlu0 %746  ;;  %v1056_v48 = vsel %vm1036_vm8, %v1023_v12, %v776_v62 }
 0x153   : > { %699 = vrot.lane.b32.xlu2 %v1727_v54, %s1566_s18  ;;  %691 = vrot.lane.b32.xlu1 %v1647_v41, %s1566_s18  ;;  %v1031_v41 = vsel %vm1003_vm7, %v998_v37, %v747_v13  ;;  %v1554_v54 = vld [vmem:[%s1600_s14 + $0x3c] sm:$0xff] }
 0x154   : > { %869 = vrot.lane.b32.xlu0 %v838_v60, %s1570_s22  ;;  %v1064_v11 = vsel %vm1036_vm8, %v1031_v41, %v2242_v2  ;;  %v2467_v2 = vld [vmem:[#allocation4_spill] sm:$0xff] }
 0x155   : > { %v831_v10 = vpop.permute.xlu1 %830  ;;  %v842_v55 = vpop.permute.xlu2 %841 }
 0x156   : > { %v823_v6 = vpop.permute.xlu0 %822  ;;  %v1097_v51 = vsel %vm1069_vm9, %v1064_v11, %v831_v10 }
 0x157   : > { %v1089_v47 = vsel %vm1069_vm9, %v1056_v48, %v823_v6 }
 0x158   : > { %v1122_v21 = vsel %vm1102_vm10, %v1089_v47, %v858_v18 }
 0x159   : > { %1498 = vmatmul.msk.bf16.gmra.mxu2 %vm1155_vm11, %v1122_v21 }
 0x15b   : > { %763 = vrot.lane.b32.xlu2 %v1554_v54, %s1569_s21  ;;  %734 = vrot.lane.b32.xlu1 %v1889_v33, %s1567_s19 }
 0x15c   : > { %726 = vrot.lane.b32.xlu0 %v1841_v44, %s1567_s19 }
 0x15d   : > { %v696_v58 = vpop.permute.xlu1 %695  ;;  %v714_v26 = vpop.permute.xlu2 %713 }
 0x15e   : > { %v866_v45 = vpop.permute.xlu0 %865  ;;  %v982_v29 = vsel %vm970_vm6, %v2116_v46, %v696_v58  ;;  %v1000_v7 = vsel %vm970_vm6, %v2169_v32, %v714_v26 }
 0x15f   : > { %v1130_v0 = vsel %vm1102_vm10, %v1097_v51, %v866_v45 }
 0x160   : > { %1502 = vmatmul.msk.bf16.gmra.mxu3 %vm1155_vm11, %v1130_v0 }
 0x163   : > { %818 = vrot.lane.b32.xlu2 %v2466_v8, %s1568_s20  ;;  %810 = vrot.lane.b32.xlu1 %v1674_v61, %s1568_s20 }
 0x164   : > { %771 = vrot.lane.b32.xlu0 %v1723_v52, %s1569_s21 }
 0x165   : > { %v760_v44 = vpop.permute.xlu1 %759  ;;  %v778_v50 = vpop.permute.xlu2 %777 }
 0x166   : > { %v731_v33 = vpop.permute.xlu0 %730  ;;  %v1040_v18 = vsel %vm1036_vm8, %v1007_v27, %v760_v44 }
 0x167   : > { %v1015_v19 = vsel %vm1003_vm7, %v982_v29, %v731_v33 }
 0x16b   : > { %853 = vrot.lane.b32.xlu1 %v2467_v2, %s1570_s22 }
 0x16c   : > { %845 = vrot.lane.b32.xlu0 %v1868_v14, %s1570_s22  ;;  %v1048_v14 = vsel %vm1036_vm8, %v1015_v19, %v768_v31 }
 0x16d   : > { %v815_v35 = vpop.permute.xlu1 %814  ;;  %v833_v42 = vpop.permute.xlu2 %832 }
 0x16e   : > { %v807_v63 = vpop.permute.xlu0 %806  ;;  %v1081_v23 = vsel %vm1069_vm9, %v1048_v14, %v815_v35 }
 0x16f   : > { %v1073_v61 = vsel %vm1069_vm9, %v1040_v18, %v807_v63 }
 0x170   : > { %v1106_v52 = vsel %vm1102_vm10, %v1073_v61, %v842_v55 }
 0x171   : > { %1490 = vmatmul.msk.bf16.gmra.mxu0 %vm1155_vm11, %v1106_v52 }
 0x175   : > { %v706_v30 = vpop.permute.xlu1 %705  ;;  %v690_v57 = vpop.permute.xlu2 %689 }
 0x176   : > { %v850_v36 = vpop.permute.xlu0 %849  ;;  %v992_v3 = vsel %vm970_vm6, %v2153_v34, %v706_v30  ;;  %v976_v10 = vsel %vm970_vm6, %v2100_v4, %v690_v57 }
 0x177   : > { %v1114_v24 = vsel %vm1102_vm10, %v1081_v23, %v850_v36 }
 0x178   : > { %1494 = vmatmul.msk.bf16.gmra.mxu1 %vm1155_vm11, %v1114_v24 }
 0x17d   : > { %v749_v38 = vpop.permute.xlu1 %748  ;;  %v733_v56 = vpop.permute.xlu2 %732 }
 0x17e   : > { %v741_v49 = vpop.permute.xlu0 %740  ;;  %v1033_v43 = vsel %vm1003_vm7, %v1000_v7, %v749_v38 }
 0x17f   : > { %v1025_v1 = vsel %vm1003_vm7, %v992_v3, %v741_v49 }
 0x180   : > { %v1058_v53 = vsel %vm1036_vm8, %v1025_v1, %v778_v50 }
 0x185   : > { %v825_v59 = vpop.permute.xlu1 %824  ;;  %v809_v34 = vpop.permute.xlu2 %808 }
 0x186   : > { %v786_v46 = vpop.permute.xlu0 %785  ;;  %v1091_v62 = vsel %vm1069_vm9, %v1058_v53, %v825_v59 }
 0x187   : > { %v1066_v15 = vsel %vm1036_vm8, %v1033_v43, %v786_v46 }
 0x188   : > { %v1099_v28 = vsel %vm1069_vm9, %v1066_v15, %v833_v42 }
 0x18d   : > { %v868_v5 = vpop.permute.xlu1 %867  ;;  %v852_v12 = vpop.permute.xlu2 %851 }
 0x18e   : > { %v860_v20 = vpop.permute.xlu0 %859  ;;  %v1132_v32 = vsel %vm1102_vm10, %v1099_v28, %v868_v5 }
 0x18f   : > { %v1124_v22 = vsel %vm1102_vm10, %v1091_v62, %v860_v20  ;;  %1503 = vmatmul.msk.bf16.gmra.mxu3 %vm1155_vm11, %v1132_v32 }
 0x190   : > { %1499 = vmatmul.msk.bf16.gmra.mxu2 %vm1155_vm11, %v1124_v22 }
 0x195   : > { %v725_v13 = vpop.permute.xlu1 %724 }
 0x196   : > { %v698_v31 = vpop.permute.xlu0 %697  ;;  %v1009_v48 = vsel %vm1003_vm7, %v976_v10, %v725_v13 }
 0x197   : > { %v984_v6 = vsel %vm970_vm6, %v2066_v25, %v698_v31  ;;  %v743_v25 = vpop.permute.xlu2 %742 }
 0x198   : > { %v1017_v21 = vsel %vm1003_vm7, %v984_v6, %v733_v56 }
 0x19d   : > { %v770_v60 = vpop.permute.xlu1 %769 }
 0x19e   : > { %v762_v40 = vpop.permute.xlu0 %761  ;;  %v1050_v41 = vsel %vm1036_vm8, %v1017_v21, %v770_v60 }
 0x19f   : > { %v1042_v47 = vsel %vm1036_vm8, %v1009_v48, %v762_v40  ;;  %v788_v2 = vpop.permute.xlu2 %787 }
 0x1a0   : > { %v1075_v55 = vsel %vm1069_vm9, %v1042_v47, %v809_v34 }
 0x1a5   : > { %v844_v37 = vpop.permute.xlu1 %843 }
 0x1a6   : > { %v817_v54 = vpop.permute.xlu0 %816  ;;  %v1108_v11 = vsel %vm1102_vm10, %v1075_v55, %v844_v37 }
 0x1a7   : > { %v1083_v58 = vsel %vm1069_vm9, %v1050_v41, %v817_v54  ;;  %1491 = vmatmul.msk.bf16.gmra.mxu0 %vm1155_vm11, %v1108_v11  ;;  %v862_v29 = vpop.permute.xlu2 %861 }
 0x1a8   : > { %v1116_v4 = vsel %vm1102_vm10, %v1083_v58, %v852_v12 }
 0x1a9   : > { %1495 = vmatmul.msk.bf16.gmra.mxu1 %vm1155_vm11, %v1116_v4 }
 0x1aa   : > { %v1241_v51 = vpop.f32.mrf.mxu2 }
 0x1ab   : > { %v1297_v45 = vpack.c.bf16 %v1241_v51, %v1241_v51 }
 0x1ac   : > { %v1261_v0 = vpop.f32.mrf.mxu3 }
 0x1ad   : > { %1330 = vst.msk [vmem:[%s2359_s4 + $0x40] sm:$0xf] %vm1313_vm12, %v1297_v45  ;;  %v1305_v8 = vpack.c.bf16 %v1261_v0, %v1261_v0  ;;  %v716_v26 = vpop.permute.xlu1 %715 }
 0x1ae   : > { %v708_v44 = vpop.permute.xlu0 %707 }
 0x1af   : > { %1338 = vst.msk [vmem:[%s2359_s4 + $0x60] sm:$0xf] %vm1313_vm12, %v1305_v8  ;;  %v994_v61 = vsel %vm970_vm6, %v2149_v9, %v708_v44  ;;  %v1002_v9 = vsel %vm970_vm6, %v2113_v17, %v716_v26  ;;  %v700_v53 = vpop.permute.xlu2 %699 }
 0x1b0   : > { %v1027_v19 = vsel %vm1003_vm7, %v994_v61, %v743_v25  ;;  %v986_v22 = vsel %vm970_vm6, %v2134_v39, %v700_v53 }
 0x1b2   : > { %v1243_v33 = vpop.f32.mrf.mxu2 }
 0x1b3   : > { %v1298_v27 = vpack.c.bf16 %v1243_v33, %v1243_v33 }
 0x1b4   : > { %v1263_v50 = vpop.f32.mrf.mxu3 }
 0x1b5   : > { %1331 = vst.msk [vmem:[%s2359_s4 + $0x44] sm:$0xf] %vm1313_vm12, %v1298_v27  ;;  %v1306_v35 = vpack.c.bf16 %v1263_v50, %v1263_v50  ;;  %v780_v18 = vpop.permute.xlu1 %779 }
 0x1b6   : > { %v751_v63 = vpop.permute.xlu0 %750  ;;  %v1060_v23 = vsel %vm1036_vm8, %v1027_v19, %v780_v18 }
 0x1b7   : > { %1339 = vst.msk [vmem:[%s2359_s4 + $0x64] sm:$0xf] %vm1313_vm12, %v1306_v35  ;;  %v1035_v57 = vsel %vm1003_vm7, %v1002_v9, %v751_v63  ;;  %v764_v62 = vpop.permute.xlu2 %763 }
 0x1b8   : > { %v1068_v46 = vsel %vm1036_vm8, %v1035_v57, %v788_v2 }
 0x1bc   : > { %v1201_v52 = vpop.f32.mrf.mxu0 }
 0x1bd   : > { %v1281_v14 = vpack.c.bf16 %v1201_v52, %v1201_v52  ;;  %v835_v30 = vpop.permute.xlu1 %834 }
 0x1be   : > { %v1221_v36 = vpop.f32.mrf.mxu1  ;;  %v827_v42 = vpop.permute.xlu0 %826  ;;  %v1101_v43 = vsel %vm1069_vm9, %v1068_v46, %v835_v30 }
 0x1bf   : > { %1314 = vst.msk [vmem:[%s2359_s4] sm:$0xf] %vm1313_vm12, %v1281_v14  ;;  %v1289_v24 = vpack.c.bf16 %v1221_v36, %v1221_v36  ;;  %v1093_v38 = vsel %vm1069_vm9, %v1060_v23, %v827_v42  ;;  %v819_v40 = vpop.permute.xlu2 %818 }
 0x1c0   : > { %v1126_v49 = vsel %vm1102_vm10, %v1093_v38, %v862_v29 }
 0x1c1   : > { %1322 = vst.msk [vmem:[%s2359_s4 + $0x20] sm:$0xf] %vm1313_vm12, %v1289_v24  ;;  %1500 = vmatmul.msk.bf16.gmra.mxu2 %vm1155_vm11, %v1126_v49 }
 0x1c4   : > { %v1203_v59 = vpop.f32.mrf.mxu0 }
 0x1c5   : > { %v1282_v7 = vpack.c.bf16 %v1203_v59, %v1203_v59  ;;  %v692_v3 = vpop.permute.xlu1 %691 }
 0x1c6   : > { %v1223_v1 = vpop.f32.mrf.mxu1  ;;  %v870_v15 = vpop.permute.xlu0 %869  ;;  %v978_v34 = vsel %vm970_vm6, %v2048_v16, %v692_v3 }
 0x1c7   : > { %1315 = vst.msk [vmem:[%s2359_s4 + $0x4] sm:$0xf] %vm1313_vm12, %v1282_v7  ;;  %v1290_v56 = vpack.c.bf16 %v1223_v1, %v1223_v1  ;;  %v1134_v17 = vsel %vm1102_vm10, %v1101_v43, %v870_v15 }
 0x1c8   : > { %1504 = vmatmul.msk.bf16.gmra.mxu3 %vm1155_vm11, %v1134_v17 }
 0x1c9   : > { %1323 = vst.msk [vmem:[%s2359_s4 + $0x24] sm:$0xf] %vm1313_vm12, %v1290_v56 }
 0x1cd   : > { %v735_v5 = vpop.permute.xlu1 %734 }
 0x1ce   : > { %v727_v28 = vpop.permute.xlu0 %726  ;;  %v1019_v13 = vsel %vm1003_vm7, %v986_v22, %v735_v5 }
 0x1cf   : > { %v1011_v31 = vsel %vm1003_vm7, %v978_v34, %v727_v28 }
 0x1d0   : > { %v1044_v10 = vsel %vm1036_vm8, %v1011_v31, %v764_v62 }
 0x1d5   : > { %v811_v20 = vpop.permute.xlu1 %810 }
 0x1d6   : > { %v772_v32 = vpop.permute.xlu0 %771  ;;  %v1077_v39 = vsel %vm1069_vm9, %v1044_v10, %v811_v20 }
 0x1d7   : > { %v1052_v60 = vsel %vm1036_vm8, %v1019_v13, %v772_v32 }
 0x1d8   : > { %v1085_v48 = vsel %vm1069_vm9, %v1052_v60, %v819_v40 }
 0x1dc   : > { %v1246_v12 = vpop.f32.mrf.mxu2 }
 0x1dd   : > { %v1299_v6 = vpack.c.bf16 %v1246_v12, %v1246_v12  ;;  %v854_v47 = vpop.permute.xlu1 %853 }
 0x1de   : > { %v846_v16 = vpop.permute.xlu0 %845  ;;  %v1118_v21 = vsel %vm1102_vm10, %v1085_v48, %v854_v47 }
 0x1df   : > { %1332 = vst.msk [vmem:[%s2359_s4 + $0x48] sm:$0xf] %vm1313_vm12, %v1299_v6  ;;  %v1110_v37 = vsel %vm1102_vm10, %v1077_v39, %v846_v16  ;;  %1496 = vmatmul.msk.bf16.gmra.mxu1 %vm1155_vm11, %v1118_v21 }
 0x1e0   : > { %1492 = vmatmul.msk.bf16.gmra.mxu0 %vm1155_vm11, %v1110_v37 }
 0x1e3   : > { %v1266_v55 = vpop.f32.mrf.mxu3 }
 0x1e4   : > { %v1307_v41 = vpack.c.bf16 %v1266_v55, %v1266_v55  ;;  %v1248_v54 = vpop.f32.mrf.mxu2 }
 0x1e5   : > { %v1300_v11 = vpack.c.bf16 %v1248_v54, %v1248_v54 }
 0x1e6   : > { %1340 = vst.msk [vmem:[%s2359_s4 + $0x68] sm:$0xf] %vm1313_vm12, %v1307_v41 }
 0x1e7   : > { %1333 = vst.msk [vmem:[%s2359_s4 + $0x4c] sm:$0xf] %vm1313_vm12, %v1300_v11 }
 0x1eb   : > { %v1268_v58 = vpop.f32.mrf.mxu3 }
 0x1ec   : > { %v1308_v4 = vpack.c.bf16 %v1268_v58, %v1268_v58 }
 0x1ee   : > { %1341 = vst.msk [vmem:[%s2359_s4 + $0x6c] sm:$0xf] %vm1313_vm12, %v1308_v4  ;;  %v1206_v25 = vpop.f32.mrf.mxu0 }
 0x1ef   : > { %v1283_v51 = vpack.c.bf16 %v1206_v25, %v1206_v25 }
 0x1f1   : > { %1316 = vst.msk [vmem:[%s2359_s4 + $0x8] sm:$0xf] %vm1313_vm12, %v1283_v51 }
 0x1f5   : > { %v1226_v45 = vpop.f32.mrf.mxu1 }
 0x1f6   : > { %v1291_v0 = vpack.c.bf16 %v1226_v45, %v1226_v45  ;;  %v1208_v8 = vpop.f32.mrf.mxu0 }
 0x1f7   : > { %v1284_v26 = vpack.c.bf16 %v1208_v8, %v1208_v8 }
 0x1f8   : > { %1324 = vst.msk [vmem:[%s2359_s4 + $0x28] sm:$0xf] %vm1313_vm12, %v1291_v0 }
 0x1f9   : > { %1317 = vst.msk [vmem:[%s2359_s4 + $0xc] sm:$0xf] %vm1313_vm12, %v1284_v26 }
 0x1fd   : > { %v1228_v44 = vpop.f32.mrf.mxu1 }
 0x1fe   : > { %v1292_v33 = vpack.c.bf16 %v1228_v44, %v1228_v44 }
 0x200   : > { %1325 = vst.msk [vmem:[%s2359_s4 + $0x2c] sm:$0xf] %vm1313_vm12, %v1292_v33 }
 0x212   : > { %v1271_v2 = vpop.f32.mrf.mxu3 }
 0x213   : > { %v1251_v27 = vpop.f32.mrf.mxu2  ;;  %v1309_v50 = vpack.c.bf16 %v1271_v2, %v1271_v2 }
 0x214   : > { %v1301_v35 = vpack.c.bf16 %v1251_v27, %v1251_v27 }
 0x215   : > { %1342 = vst.msk [vmem:[%s2359_s4 + $0x70] sm:$0xf] %vm1313_vm12, %v1309_v50 }
 0x216   : > { %1334 = vst.msk [vmem:[%s2359_s4 + $0x50] sm:$0xf] %vm1313_vm12, %v1301_v35 }
 0x21a   : > { %v1273_v18 = vpop.f32.mrf.mxu3 }
 0x21b   : > { %v1253_v63 = vpop.f32.mrf.mxu2  ;;  %v1310_v61 = vpack.c.bf16 %v1273_v18, %v1273_v18 }
 0x21c   : > { %v1302_v52 = vpack.c.bf16 %v1253_v63, %v1253_v63 }
 0x21d   : > { %1343 = vst.msk [vmem:[%s2359_s4 + $0x74] sm:$0xf] %vm1313_vm12, %v1310_v61 }
 0x21e   : > { %1335 = vst.msk [vmem:[%s2359_s4 + $0x54] sm:$0xf] %vm1313_vm12, %v1302_v52 }
 0x224   : > { %v1211_v29 = vpop.f32.mrf.mxu0 }
 0x225   : > { %v1285_v19 = vpack.c.bf16 %v1211_v29, %v1211_v29 }
 0x226   : > { %v1231_v14 = vpop.f32.mrf.mxu1 }
 0x227   : > { %1318 = vst.msk [vmem:[%s2359_s4 + $0x10] sm:$0xf] %vm1313_vm12, %v1285_v19  ;;  %v1293_v30 = vpack.c.bf16 %v1231_v14, %v1231_v14 }
 0x229   : > { %1326 = vst.msk [vmem:[%s2359_s4 + $0x30] sm:$0xf] %vm1313_vm12, %v1293_v30 }
 0x22c   : > { %v1213_v23 = vpop.f32.mrf.mxu0 }
 0x22d   : > { %v1286_v36 = vpack.c.bf16 %v1213_v23, %v1213_v23 }
 0x22e   : > { %v1233_v42 = vpop.f32.mrf.mxu1 }
 0x22f   : > { %1319 = vst.msk [vmem:[%s2359_s4 + $0x14] sm:$0xf] %vm1313_vm12, %v1286_v36  ;;  %v1294_v24 = vpack.c.bf16 %v1233_v42, %v1233_v42 }
 0x231   : > { %1327 = vst.msk [vmem:[%s2359_s4 + $0x34] sm:$0xf] %vm1313_vm12, %v1294_v24 }
 0x244   : > { %v1256_v38 = vpop.f32.mrf.mxu2 }
 0x245   : > { %v1303_v49 = vpack.c.bf16 %v1256_v38, %v1256_v38 }
 0x247   : > { %1336 = vst.msk [vmem:[%s2359_s4 + $0x58] sm:$0xf] %vm1313_vm12, %v1303_v49 }
 0x24b   : > { %v1276_v9 = vpop.f32.mrf.mxu3 }
 0x24c   : > { %v1311_v57 = vpack.c.bf16 %v1276_v9, %v1276_v9  ;;  %v1258_v59 = vpop.f32.mrf.mxu2 }
 0x24d   : > { %v1304_v46 = vpack.c.bf16 %v1258_v59, %v1258_v59 }
 0x24e   : > { %1344 = vst.msk [vmem:[%s2359_s4 + $0x78] sm:$0xf] %vm1313_vm12, %v1311_v57 }
 0x24f   : > { %1337 = vst.msk [vmem:[%s2359_s4 + $0x5c] sm:$0xf] %vm1313_vm12, %v1304_v46 }
 0x253   : > { %v1278_v7 = vpop.f32.mrf.mxu3 }
 0x254   : > { %v1312_v3 = vpack.c.bf16 %v1278_v7, %v1278_v7 }
 0x256   : > { %1345 = vst.msk [vmem:[%s2359_s4 + $0x7c] sm:$0xf] %vm1313_vm12, %v1312_v3 }
 0x25c   : > { %v1236_v43 = vpop.f32.mrf.mxu1 }
 0x25d   : > { %v1216_v1 = vpop.f32.mrf.mxu0  ;;  %v1295_v15 = vpack.c.bf16 %v1236_v43, %v1236_v43 }
 0x25e   : > { %v1287_v56 = vpack.c.bf16 %v1216_v1, %v1216_v1 }
 0x25f   : > { %1328 = vst.msk [vmem:[%s2359_s4 + $0x38] sm:$0xf] %vm1313_vm12, %v1295_v15 }
 0x260   : > { %1320 = vst.msk [vmem:[%s2359_s4 + $0x18] sm:$0xf] %vm1313_vm12, %v1287_v56 }
 0x264   : > { %v1238_v17 = vpop.f32.mrf.mxu1 }
 0x265   : > { %v1218_v53 = vpop.f32.mrf.mxu0  ;;  %v1296_v5 = vpack.c.bf16 %v1238_v17, %v1238_v17 }
 0x266   : > { %v1288_v28 = vpack.c.bf16 %v1218_v53, %v1218_v53 }
 0x267   : > { %1329 = vst.msk [vmem:[%s2359_s4 + $0x3c] sm:$0xf] %vm1313_vm12, %v1296_v5 }
 0x268   : > { %1321 = vst.msk [vmem:[%s2359_s4 + $0x1c] sm:$0xf] %vm1313_vm12, %v1288_v28 }
 0x269 PF: > { %s12_s9 = sadd.s32 1, %s1561_s9  }
 0x26a   : > { %p9_p4 = scmp.ge.s32.totalorder %s12_s9, 4  }
 0x26c   :  { %11 = sbr.rel (!%p9_p4) target bundleno = 1 (0x1), region = 58 }

</bundles_post_ra>
